<compile_context>
chip_gen: v5e
topology: v5e:2x2
jax: 0.10.0
libtpu: 0.0.40
codegen_flags: <defaults>
</compile_context>

<pallas_src>
import jax
import jax.numpy as jnp
from jax.experimental import pallas as pl
from jax.experimental.pallas import tpu as pltpu

IN_FEATURES = 111
IN_PAD = 128          # lane-aligned input width
HIDDEN = 32           # "lr" constructor argument of Tennis_NN
OUT_FEATURES = 2
OUT_PAD = 128         # lane-aligned output width (sliced to 2 outside)
BN_EPS = 1e-5


def tennis_nn_kernel(x_ref, w1_ref, bn_ref, w2b2_ref, out_ref):
    x = x_ref[...]                          # (B, 128) f32, cols 111..127 are zero
    w1 = w1_ref[...]                        # (128, H), rows 111..127 are zero
    b1 = bn_ref[0:1, :]                     # (1, H)
    gamma = bn_ref[1:2, :]                  # (1, H)
    beta = bn_ref[2:3, :]                   # (1, H)
    w2 = w2b2_ref[0:HIDDEN, :]              # (H, 128), cols 2..127 are zero
    b2 = w2b2_ref[HIDDEN:HIDDEN + 1, :]     # (1, 128), cols 2..127 are zero

    # Linear(111 -> H)  (MXU, lane-aligned)
    h = jnp.dot(x, w1, preferred_element_type=jnp.float32) + b1     # (B, H)

    # BatchNorm1d(H), training mode (biased batch statistics), single pass:
    # both reductions are issued directly from h, then folded into scale/shift.
    inv_b = jnp.float32(1.0 / x.shape[0])
    s = jnp.sum(h, axis=0, keepdims=True)                           # (1, H)
    sq = jnp.sum(h * h, axis=0, keepdims=True)                      # (1, H)
    mean = s * inv_b
    var = sq * inv_b - mean * mean                                  # biased var
    scale = gamma * jax.lax.rsqrt(var + BN_EPS)                     # (1, H)
    shift = beta - mean * scale                                     # (1, H)

    # BN + ReLU fused as one scale/shift + max
    h_relu = jnp.maximum(h * scale + shift, 0.0)                    # (B, H)

    # Linear(H -> 2), lane-padded to 128 output columns (dense store).
    logits = jnp.dot(h_relu, w2, preferred_element_type=jnp.float32) + b2  # (B, 128)

    # Sigmoid epilogue on the EUP.
    out_ref[...] = jax.nn.sigmoid(logits)


def pack_params(w1, b1, gamma, beta, w2, b2):
    """One-time parameter packing / lane alignment (done outside the hot path)."""
    # Pad the contraction dim of w1 to 128 with zero rows (free correctness-wise).
    w1_pad = jnp.pad(w1, ((0, IN_PAD - IN_FEATURES), (0, 0)))               # (128, H)
    # Pack the three (1, H) BatchNorm/bias vectors into a single operand.
    bn_pack = jnp.concatenate([b1, gamma, beta], axis=0)                    # (3, H)
    # Pack w2 (lane-padded to 128 cols) and b2 into one sublane-aligned operand.
    w2_pad = jnp.pad(w2, ((0, 0), (0, OUT_PAD - OUT_FEATURES)))             # (H, 128)
    b2_pad = jnp.pad(b2, ((0, 0), (0, OUT_PAD - OUT_FEATURES)))             # (1, 128)
    w2b2 = jnp.concatenate(
        [w2_pad, b2_pad, jnp.zeros((7, OUT_PAD), jnp.float32)], axis=0)     # (H+8, 128)
    return w1_pad, bn_pack, w2b2


@jax.jit
def tennis_nn_forward(x, w1_pad, bn_pack, w2b2):
    batch = x.shape[0]
    # Lane-align the activations (zero columns 111..127).
    x_pad = jnp.pad(x, ((0, 0), (0, IN_PAD - IN_FEATURES)))

    vmem = pltpu.MemorySpace.VMEM
    out_pad = pl.pallas_call(
        tennis_nn_kernel,
        out_shape=jax.ShapeDtypeStruct((batch, OUT_PAD), jnp.float32),
        in_specs=[
            pl.BlockSpec(memory_space=vmem),   # x_pad   (B, 128)
            pl.BlockSpec(memory_space=vmem),   # w1_pad  (128, H)
            pl.BlockSpec(memory_space=vmem),   # bn_pack (3, H)
            pl.BlockSpec(memory_space=vmem),   # w2b2    (H+8, 128)
        ],
        out_specs=pl.BlockSpec(memory_space=vmem),
    )(x_pad, w1_pad, bn_pack, w2b2)

    return out_pad[:, :OUT_FEATURES]


def init_params(key):
    """Deterministic PyTorch-style (uniform +/- 1/sqrt(fan_in)) initialization."""
    k1, k2, k3, k4 = jax.random.split(key, 4)
    bound1 = 1.0 / jnp.sqrt(jnp.float32(IN_FEATURES))
    w1 = jax.random.uniform(k1, (IN_FEATURES, HIDDEN), jnp.float32, -bound1, bound1)
    b1 = jax.random.uniform(k2, (1, HIDDEN), jnp.float32, -bound1, bound1)
    # BatchNorm1d defaults: weight=1, bias=0
    gamma = jnp.ones((1, HIDDEN), jnp.float32)
    beta = jnp.zeros((1, HIDDEN), jnp.float32)
    bound2 = 1.0 / jnp.sqrt(jnp.float32(HIDDEN))
    w2 = jax.random.uniform(k3, (HIDDEN, OUT_FEATURES), jnp.float32, -bound2, bound2)
    b2 = jax.random.uniform(k4, (1, OUT_FEATURES), jnp.float32, -bound2, bound2)
    return w1, b1, gamma, beta, w2, b2


def reference_forward(x, w1, b1, gamma, beta, w2, b2):
    """Pure-JAX reference identical to the PyTorch forward (training-mode BN)."""
    h = x @ w1 + b1
    mean = h.mean(axis=0, keepdims=True)
    var = ((h - mean) ** 2).mean(axis=0, keepdims=True)   # biased variance
    h = (h - mean) / jnp.sqrt(var + BN_EPS) * gamma + beta
    h = jnp.maximum(h, 0.0)
    return jax.nn.sigmoid(h @ w2 + b2)


if __name__ == "__main__":
    key = jax.random.PRNGKey(0)
    kx, kp = jax.random.split(key)

    batch = 8
    x = jax.random.normal(kx, (batch, IN_FEATURES), jnp.float32)
    w1, b1, gamma, beta, w2, b2 = init_params(kp)

    w1_pad, bn_pack, w2b2 = pack_params(w1, b1, gamma, beta, w2, b2)

    out = tennis_nn_forward(x, w1_pad, bn_pack, w2b2)
    jax.block_until_ready(out)

    ref = reference_forward(x, w1, b1, gamma, beta, w2, b2)
    assert out.shape == (batch, OUT_FEATURES)
    assert jnp.allclose(out, ref, atol=5e-5, rtol=1e-5), "mismatch vs JAX reference"

    print("KERNEL_OK")
</pallas_src>

<mosaic_0001>
module attributes {stable_mosaic.version = 11 : i64} {
  func.func @tennis_nn_kernel(%arg0: memref<8x128xf32, #tpu.memory_space<vmem>>, %arg1: memref<128x32xf32, #tpu.memory_space<vmem>>, %arg2: memref<3x32xf32, #tpu.memory_space<vmem>>, %arg3: memref<40x128xf32, #tpu.memory_space<vmem>>, %arg4: memref<8x128xf32, #tpu.memory_space<vmem>>) attributes {dimension_semantics = [], scalar_prefetch = 0 : i64, scratch_operands = 0 : i64, tpu.core_type = #tpu.core_type<tc>} {
    %c0 = arith.constant 0 : index
    %c0_0 = arith.constant 0 : index
    %0 = vector.load %arg0[%c0, %c0_0] : memref<8x128xf32, #tpu.memory_space<vmem>>, vector<8x128xf32>
    %c0_1 = arith.constant 0 : index
    %c0_2 = arith.constant 0 : index
    %1 = vector.load %arg1[%c0_1, %c0_2] : memref<128x32xf32, #tpu.memory_space<vmem>>, vector<128x32xf32>
    %c0_3 = arith.constant 0 : index
    %c0_4 = arith.constant 0 : index
    %2 = vector.load %arg2[%c0_3, %c0_4] : memref<3x32xf32, #tpu.memory_space<vmem>>, vector<1x32xf32>
    %c1 = arith.constant 1 : index
    %c0_5 = arith.constant 0 : index
    %3 = vector.load %arg2[%c1, %c0_5] : memref<3x32xf32, #tpu.memory_space<vmem>>, vector<1x32xf32>
    %c2 = arith.constant 2 : index
    %c0_6 = arith.constant 0 : index
    %4 = vector.load %arg2[%c2, %c0_6] : memref<3x32xf32, #tpu.memory_space<vmem>>, vector<1x32xf32>
    %c0_7 = arith.constant 0 : index
    %c0_8 = arith.constant 0 : index
    %5 = vector.load %arg3[%c0_7, %c0_8] : memref<40x128xf32, #tpu.memory_space<vmem>>, vector<32x128xf32>
    %c32 = arith.constant 32 : index
    %c0_9 = arith.constant 0 : index
    %6 = vector.load %arg3[%c32, %c0_9] : memref<40x128xf32, #tpu.memory_space<vmem>>, vector<1x128xf32>
    %cst = arith.constant dense<0.000000e+00> : vector<8x32xf32>
    %7 = tpu.matmul %0, %1, %cst {dimension_numbers = #tpu.dot_dimension_numbers<[1], [0], [0], [1], [0, 0, 1, 1], [], []>} : vector<8x128xf32>, vector<128x32xf32>, vector<8x32xf32> -> vector<8x32xf32>
    %8 = vector.broadcast %2 : vector<1x32xf32> to vector<8x32xf32>
    %9 = arith.addf %7, %8 : vector<8x32xf32>
    %cst_10 = arith.constant dense<0.000000e+00> : vector<32xf32>
    %10 = vector.multi_reduction <add>, %9, %cst_10 [0] : vector<8x32xf32> to vector<32xf32>
    %11 = vector.shape_cast %10 : vector<32xf32> to vector<1x32xf32>
    %12 = arith.mulf %9, %9 : vector<8x32xf32>
    %cst_11 = arith.constant dense<0.000000e+00> : vector<32xf32>
    %13 = vector.multi_reduction <add>, %12, %cst_11 [0] : vector<8x32xf32> to vector<32xf32>
    %14 = vector.shape_cast %13 : vector<32xf32> to vector<1x32xf32>
    %cst_12 = arith.constant 1.250000e-01 : f32
    %15 = vector.broadcast %cst_12 : f32 to vector<1x32xf32>
    %16 = arith.mulf %11, %15 : vector<1x32xf32>
    %cst_13 = arith.constant 1.250000e-01 : f32
    %17 = vector.broadcast %cst_13 : f32 to vector<1x32xf32>
    %18 = arith.mulf %14, %17 : vector<1x32xf32>
    %19 = arith.mulf %16, %16 : vector<1x32xf32>
    %20 = arith.subf %18, %19 : vector<1x32xf32>
    %cst_14 = arith.constant 9.99999974E-6 : f32
    %21 = vector.broadcast %cst_14 : f32 to vector<1x32xf32>
    %22 = arith.addf %20, %21 : vector<1x32xf32>
    %23 = math.rsqrt %22 : vector<1x32xf32>
    %24 = arith.mulf %3, %23 : vector<1x32xf32>
    %25 = arith.mulf %16, %24 : vector<1x32xf32>
    %26 = arith.subf %4, %25 : vector<1x32xf32>
    %27 = vector.broadcast %24 : vector<1x32xf32> to vector<8x32xf32>
    %28 = arith.mulf %9, %27 : vector<8x32xf32>
    %29 = vector.broadcast %26 : vector<1x32xf32> to vector<8x32xf32>
    %30 = arith.addf %28, %29 : vector<8x32xf32>
    %cst_15 = arith.constant 0.000000e+00 : f32
    %31 = vector.broadcast %cst_15 : f32 to vector<8x32xf32>
    %32 = arith.maximumf %30, %31 : vector<8x32xf32>
    %cst_16 = arith.constant dense<0.000000e+00> : vector<8x128xf32>
    %33 = tpu.matmul %32, %5, %cst_16 {dimension_numbers = #tpu.dot_dimension_numbers<[1], [0], [0], [1], [0, 0, 1, 1], [], []>} : vector<8x32xf32>, vector<32x128xf32>, vector<8x128xf32> -> vector<8x128xf32>
    %34 = vector.broadcast %6 : vector<1x128xf32> to vector<8x128xf32>
    %35 = arith.addf %33, %34 : vector<8x128xf32>
    %36 = arith.negf %35 : vector<8x128xf32>
    %37 = math.exp %36 : vector<8x128xf32>
    %cst_17 = arith.constant 1.000000e+00 : f32
    %38 = vector.broadcast %cst_17 : f32 to vector<8x128xf32>
    %39 = arith.addf %38, %37 : vector<8x128xf32>
    %40 = arith.divf %38, %39 : vector<8x128xf32>
    %c0_18 = arith.constant 0 : index
    %c0_19 = arith.constant 0 : index
    %41 = vector.load %arg4[%c0_18, %c0_19] : memref<8x128xf32, #tpu.memory_space<vmem>>, vector<8x128xf32>
    tpu.vector_store %arg4[%c0_18, %c0_19], %40 {strides = array<i32>} : memref<8x128xf32, #tpu.memory_space<vmem>>, vector<8x128xf32>,
    return
  }
}

</mosaic_0001>

<bundles_post_ra>
// kernel: tennis_nn_forward.1
= control target key start
LH: loop header
LB: loop body
LE: loop exit
PB: predicated region body
PF: predicated region fallthrough
CT: control target
= control target key end

     0   :  { %vm63_vm0 = vcmask 261120   ;;  %s266_s1 = inlined_call_operand.vmem [shape: f32[128,32], index: 1, kind: input, shape index: {}]   ;;  %s267_s2 = inlined_call_operand.vmem [shape: f32[3,32], index: 2, kind: input, shape index: {}]   ;;  %s268_s0 = inlined_call_operand.vmem [shape: f32[8,128], index: 0, kind: input, shape index: {}]   ;;  %s269_s3 = inlined_call_operand.vmem [shape: f32[40,128], index: 3, kind: input, shape index: {}]   ;;  %s270_s4 = inlined_call_operand.vmem [shape: f32[8,128], index: 4, kind: output, shape index: {}]  }
   0x1   :  { %v33_v0 = vld [vmem:[%s266_s1 + $0x78] sm:$0xff]  ;;  %v32_v1 = vld [vmem:[%s266_s1 + $0x70] sm:$0xff]  ;;  %v31_v2 = vld [vmem:[%s266_s1 + $0x68] sm:$0xff] }
   0x2   :  { %43 = vmatpush.msra.mxu0 %v33_v0  ;;  %v30_v3 = vld [vmem:[%s266_s1 + $0x60] sm:$0xff]  ;;  %v29_v4 = vld [vmem:[%s266_s1 + $0x58] sm:$0xff]  ;;  %v28_v5 = vld [vmem:[%s266_s1 + $0x50] sm:$0xff] }
   0x3   :  { %v27_v6 = vld [vmem:[%s266_s1 + $0x48] sm:$0xff]  ;;  %v26_v7 = vld [vmem:[%s266_s1 + $0x40] sm:$0xff]  ;;  %v25_v8 = vld [vmem:[%s266_s1 + $0x38] sm:$0xff] }
   0x4   :  { %44 = vmatpush.msra.mxu0 %v32_v1  ;;  %v24_v9 = vld [vmem:[%s266_s1 + $0x30] sm:$0xff]  ;;  %v23_v10 = vld [vmem:[%s266_s1 + $0x28] sm:$0xff]  ;;  %v22_v11 = vld [vmem:[%s266_s1 + $0x20] sm:$0xff] }
   0x5   :  { %v21_v12 = vld [vmem:[%s266_s1 + $0x18] sm:$0xff]  ;;  %v20_v13 = vld [vmem:[%s266_s1 + $0x10] sm:$0xff]  ;;  %v19_v14 = vld [vmem:[%s266_s1 + $0x8] sm:$0xff] }
   0x6   :  { %45 = vmatpush.msra.mxu0 %v31_v2  ;;  %v18_v15 = vld [vmem:[%s266_s1] sm:$0xff]  ;;  %v40_v17 = vld [vmem:[%s269_s3 + $0x18] sm:$0xff]  ;;  %v39_v18 = vld [vmem:[%s269_s3 + $0x10] sm:$0xff] }
   0x7   :  { %v17_v16 = vld [vmem:[%s268_s0] sm:$0xff]  ;;  %118 = vmatpush.msra.mxu1 %v40_v17  ;;  %v38_v19 = vld [vmem:[%s269_s3 + $0x8] sm:$0xff] }
   0x8   :  { %46 = vmatpush.msra.mxu0 %v30_v3  ;;  %v37_v20 = vld [vmem:[%s269_s3] sm:$0xff] }
   0x9   :  { %119 = vmatpush.msra.mxu1 %v39_v18  ;;  %v152_v21 = vld [vmem:[%s267_s2] ss:$0 sm:$0xff]  ;;  %v35_v49 = vld [vmem:[%s267_s2 + $0x1] sm:$0x1]  ;;  %v36_v53 = vld [vmem:[%s267_s2 + $0x2] sm:$0x1] }
   0xa   :  { %47 = vmatpush.msra.mxu0 %v29_v4  ;;  %v153_v61 = vld [vmem:[%s269_s3 + $0x20] ss:$0 sm:$0xff] }
   0xb   :  { %120 = vmatpush.msra.mxu1 %v38_v19 }
   0xc   :  { %48 = vmatpush.msra.mxu0 %v28_v5 }
   0xd   :  { %121 = vmatpush.msra.mxu1 %v37_v20 }
   0xe   :  { %49 = vmatpush.msra.mxu0 %v27_v6 }
  0x10   :  { %50 = vmatpush.msra.mxu0 %v26_v7 }
  0x12   :  { %51 = vmatpush.msra.mxu0 %v25_v8 }
  0x14   :  { %52 = vmatpush.msra.mxu0 %v24_v9 }
  0x16   :  { %53 = vmatpush.msra.mxu0 %v23_v10 }
  0x18   :  { %54 = vmatpush.msra.mxu0 %v22_v11 }
  0x1a   :  { %55 = vmatpush.msra.mxu0 %v21_v12 }
  0x1c   :  { %56 = vmatpush.msra.mxu0 %v20_v13 }
  0x1e   :  { %57 = vmatpush.msra.mxu0 %v19_v14 }
  0x20   :  { %58 = vmatpush.msra.mxu0 %v18_v15 }
  0x21   :  { %59 = vmatmul.f32.vlgmr.msra.gmra.mxu0 %v17_v16 }
  0x9e   :  { %v60_v22 = vpop.f32.mrf.mxu0 }
  0x9f   :  { %v61_v23 = vadd.f32 %v152_v21, %v60_v22 }
  0xa1   :  { %v71_v24 = vmul.f32 %v61_v23, %v61_v23  ;;  %v64_v25 = vsel %vm63_vm0, %v61_v23, 0.0 }
  0xa2   :  { %v65_v26 = vrot.slane %v64_v25, 4 }
  0xa3   :  { %v72_v27 = vsel %vm63_vm0, %v71_v24, 0.0 }
  0xa4   :  { %v66_v28 = vadd.f32 %v65_v26, %v64_v25  ;;  %v73_v29 = vrot.slane %v72_v27, 4 }
  0xa6   :  { %v67_v30 = vrot.slane %v66_v28, 2  ;;  %v74_v31 = vadd.f32 %v73_v29, %v72_v27 }
  0xa8   :  { %v68_v32 = vadd.f32 %v67_v30, %v66_v28  ;;  %v75_v33 = vrot.slane %v74_v31, 2 }
  0xaa   :  { %v69_v34 = vrot.slane %v68_v32, 1  ;;  %v76_v35 = vadd.f32 %v75_v33, %v74_v31 }
  0xac   :  { %v70_v36 = vadd.f32 %v69_v34, %v68_v32  ;;  %v77_v37 = vrot.slane %v76_v35, 1 }
  0xae   :  { %v78_v38 = vadd.f32 %v77_v37, %v76_v35  ;;  %v79_v39 = vmul.f32 0.125, %v70_v36 }
  0xb0   :  { %v80_v40 = vmul.f32 0.125, %v78_v38  ;;  %v81_v41 = vmul.f32 %v79_v39, %v79_v39 }
  0xb2   :  { %v82_v42 = vsub.f32 %v80_v40, %v81_v41 }
  0xb4   :  { %v83_v43 = vadd.f32 1e-05, %v82_v42 }
  0xb6   :  { %154 = vrsqrt.f32 %v83_v43  ;;  %vm90_vm2 = vweird.f32 %v83_v43 }
  0xbc   :  { %v155_v44 = vpop.eup %154 }
  0xbd   :  { %v85_v45 = vmul.f32 %v155_v44, %v83_v43  ;;  %vm91_vm1 = vweird.f32 %v155_v44 }
  0xbe   :  { %vm92_vm3 = vmor %vm90_vm2, %vm91_vm1 }
  0xbf   :  { %v86_v46 = vmul.f32 %v155_v44, %v85_v45 }
  0xc1   :  { %v87_v47 = vmul.f32 0.5, %v86_v46 }
  0xc3   :  { %v88_v48 = vsub.f32 1.5, %v87_v47 }
  0xc5   :  { %v89_v50 = vmul.f32 %v155_v44, %v88_v48 }
  0xc7   :  { %v93_v51 = vsel %vm92_vm3, %v155_v44, %v89_v50 }
  0xc8   :  { %v94_v52 = vmul.f32 %v93_v51, %v35_v49 }
  0xca   :  { %v95_v54 = vmul.f32 %v94_v52, %v79_v39  ;;  %v97_v55 = vperm.slane %v94_v52, 0 }
  0xcc   :  { %v96_v56 = vsub.f32 %v36_v53, %v95_v54  ;;  %v98_v57 = vmul.f32 %v97_v55, %v61_v23 }
  0xce   :  { %v99_v58 = vperm.slane %v96_v56, 0 }
  0xd0   :  { %v100_v59 = vadd.f32 %v99_v58, %v98_v57 }
  0xd2   :  { %v101_v60 = vmax.f32 %v100_v59, 0.0 }
  0xd4   :  { %150 = vmatmul.msk.f32.vlgmr.msra.gmra.mxu1 %vm63_vm0, %v101_v60 }
 0x151   :  { %v123_v62 = vpop.f32.mrf.mxu1 }
 0x152   :  { %v124_v63 = vadd.f32 %v153_v61, %v123_v62 }
 0x154   :  { %v151_v0 = vmul.f32 -1.442695, %v124_v63 }
 0x156   :  { %156 = vpow2.f32 %v151_v0 }
 0x15c   :  { %v157_v1 = vpop.eup %156 }
 0x15d   :  { %v129_v2 = vadd.f32 1.0, %v157_v1 }
 0x15f   :  { %158 = vrcp.f32 %v129_v2  ;;  %v141_v6 = vand.u32 2147483648, %v129_v2  ;;  %v139_v8 = vand.u32 2147483647, %v129_v2  ;;  %vm135_vm5 = vweird.f32 %v129_v2 }
 0x161   :  { %v142_v10 = vor.u32 1.1754944e-38, %v141_v6  ;;  %vm140_vm7 = vcmp.eq.f32.partialorder %v139_v8, 8.507059e+37 }
 0x165   :  { %v159_v3 = vpop.eup %158 }
 0x166   :  { %v131_v4 = vmul.f32 %v159_v3, %v129_v2  ;;  %vm136_vm4 = vweird.f32 %v159_v3 }
 0x167   :  { %vm137_vm6 = vmor %vm135_vm5, %vm136_vm4 }
 0x168   :  { %v132_v5 = vsub.f32 1.0, %v131_v4 }
 0x16a   :  { %v133_v7 = vmul.f32 %v159_v3, %v132_v5 }
 0x16c   :  { %v134_v9 = vadd.f32 %v159_v3, %v133_v7 }
 0x16e   :  { %v138_v11 = vsel %vm137_vm6, %v159_v3, %v134_v9 }
 0x16f   :  { %v143_v12 = vsel %vm140_vm7, %v142_v10, %v138_v11 }
 0x170   :  { %145 = vst [vmem:[%s270_s4] sm:$0xff] %v143_v12 }

</bundles_post_ra>
